<compile_context>
chip_gen: v5e
topology: v5e:2x2
jax: 0.10.0
libtpu: 0.0.40
codegen_flags: <defaults>
</compile_context>

<pallas_src>
import math

import numpy as np
import jax
import jax.numpy as jnp
from jax import lax
from jax.experimental import pallas as pl
from jax.experimental.pallas import tpu as pltpu

_A = -0.75  # PyTorch bicubic convolution coefficient


# ----------------------------------------------------------------------------
# Host-side (glue) construction of the folded crop+resample operators.
# ----------------------------------------------------------------------------
def _sinc(x):
    x = np.asarray(x, dtype=np.float64)
    xs = np.where(x == 0.0, 1.0, x)                       # avoid 0/0 warning
    return np.where(x == 0.0, 1.0, np.sin(np.pi * xs) / (np.pi * xs))


def _lanczos(x, a):
    cond = np.logical_and(-a < x, x < a)
    out = np.where(cond, _sinc(x) * _sinc(x / a), 0.0)
    return out / out.sum()


def _ramp(ratio, width):
    n = math.ceil(width / ratio + 1)
    vals = []
    cur = 0.0
    for _ in range(n):
        vals.append(cur)
        cur += ratio
    out = np.asarray(vals, dtype=np.float64)
    full = np.concatenate([-out[1:][::-1], out])
    return full[1:-1]


def _lanczos_blur_matrix(src, dst):
    """(src, src) matrix for the reflect-padded lanczos conv used when dst < src."""
    if dst >= src:
        return np.eye(src, dtype=np.float64)
    k = _lanczos(_ramp(dst / src, 2), 2)
    pad = (k.shape[0] - 1) // 2
    L = np.zeros((src, src), dtype=np.float64)
    for y in range(src):
        for j in range(k.shape[0]):
            idx = y - pad + j
            if idx < 0:                       # 'reflect' padding (no edge repeat)
                idx = -idx
            elif idx >= src:
                idx = 2 * (src - 1) - idx
            L[y, idx] += k[j]
    return L


def _cubic_weights(t):
    def cc1(x):  # |x| <= 1
        return ((_A + 2.0) * x - (_A + 3.0)) * x * x + 1.0

    def cc2(x):  # 1 < |x| < 2
        return ((_A * x - 5.0 * _A) * x + 8.0 * _A) * x - 4.0 * _A

    return np.array([cc2(t + 1.0), cc1(t), cc1(1.0 - t), cc2(2.0 - t)])


def _bicubic_matrix(src, dst):
    """(dst, src) matrix = F.interpolate(mode='bicubic', align_corners=True) along one axis."""
    B = np.zeros((dst, src), dtype=np.float64)
    scale = (src - 1) / (dst - 1) if dst > 1 else 0.0
    for i in range(dst):
        real = scale * i
        x0 = int(math.floor(real))
        t = real - x0
        w = _cubic_weights(t)
        for k in range(4):
            idx = min(max(x0 - 1 + k, 0), src - 1)  # border-clamped taps
            B[i, idx] += w[k]
    return B


def _crop_resample_matrix(side, offset, size, cut_size):
    """Fold crop-at-(offset,size) + lanczos blur + bicubic resize into one (cut_size, side) matrix."""
    M = _bicubic_matrix(size, cut_size) @ _lanczos_blur_matrix(size, cut_size)
    full = np.zeros((cut_size, side), dtype=np.float32)
    full[:, offset:offset + size] = M.astype(np.float32)
    return full


def _i32(v):
    """Python int (possibly >= 2**31) -> Python int representable as int32."""
    v &= 0xFFFFFFFF
    if v >= (1 << 31):
        v -= 1 << 32
    return v


# ----------------------------------------------------------------------------
# Pallas kernel: per (batch, cutout) step, bf16 matmuls + in-kernel noise.
# ----------------------------------------------------------------------------
def _cutout_kernel_factory(c, cut_size, side_x, s_pad, n_batch, with_noise, seed):
    two_pi = 2.0 * math.pi
    inv_2_23 = 1.0 / float(1 << 23)
    rows = c * cut_size
    pair = with_noise and (rows % 2 == 0)     # use both Box-Muller outputs

    # Host-mixed base key: decorrelates noise streams across seeds / steps.
    key_base = _i32((int(seed) * 0x9E3779B9) ^ 0x5BF03635)
    golden = _i32(0x9E3779B1)
    stream2 = _i32(0x68E31DA4)
    mul1 = _i32(0x7FEB352D)
    mul2 = _i32(0x846CA68B)

    def _shr(v, k):
        # Logical right shift for int32: arithmetic shift then mask off sign bits.
        return (v >> k) & jnp.int32((1 << (32 - k)) - 1)

    def _hash(h):
        # lowbias32-style avalanche hash: pure int32 VPU ops (xor/shift/mul).
        h = h ^ _shr(h, 16)
        h = h * jnp.int32(mul1)
        h = h ^ _shr(h, 15)
        h = h * jnp.int32(mul2)
        h = h ^ _shr(h, 16)
        return h

    def _bits(shape, key, salt):
        row = lax.broadcasted_iota(jnp.int32, shape, 0)
        col = lax.broadcasted_iota(jnp.int32, shape, 1)
        idx = row * jnp.int32(shape[1]) + col
        return _hash((idx ^ key) + jnp.int32(salt))

    def _gauss(key):
        """(rows, s_pad) standard-normal noise via counter-hash + Box-Muller."""
        shape_h = (rows // 2, s_pad) if pair else (rows, s_pad)
        h1 = _bits(shape_h, key, 0)
        h2 = _bits(shape_h, key, stream2)
        u1 = (_shr(h1, 9).astype(jnp.float32) + 1.0) * inv_2_23   # (0, 1]
        u2 = _shr(h2, 9).astype(jnp.float32) * inv_2_23           # [0, 1)
        r = jnp.sqrt(-2.0 * jnp.log(u1))
        th = two_pi * u2
        if pair:
            # cos/sin pair: halves random draws and EUP transcendentals/element.
            return jnp.concatenate([r * jnp.cos(th), r * jnp.sin(th)], axis=0)
        return r * jnp.cos(th)

    def _matmuls(mh_ref, mwt_ref, img_ref, tmp_ref):
        mh = mh_ref[0]                 # (S, H)      bf16
        mwt = mwt_ref[0]               # (W, s_pad)  bf16 (host-transposed)
        # First matmul: per-channel M_h @ img[ch] into a bf16 VMEM scratch
        # (bf16 scratch halves VMEM + vld bytes feeding the second matmul).
        for ch in range(c):            # small static unroll over channels
            tmp_ref[pl.ds(ch * cut_size, cut_size), :] = jnp.dot(
                mh, img_ref[0, ch],
                preferred_element_type=jnp.float32).astype(jnp.bfloat16)
        # Second matmul fused over channels: (c*S, W) @ (W, s_pad) on the MXU.
        return jnp.dot(tmp_ref[...], mwt, preferred_element_type=jnp.float32)

    def kernel_noise(mh_ref, mwt_ref, img_ref, facs_ref, out_ref, tmp_ref):
        b = pl.program_id(0)           # batch index (outer: image block resident)
        i = pl.program_id(1)           # cutout index (inner)
        out_idx = i * n_batch + b
        res = _matmuls(mh_ref, mwt_ref, img_ref, tmp_ref)        # (c*S, s_pad) f32
        key = jnp.int32(key_base) ^ (out_idx * jnp.int32(golden))
        z = _gauss(key)
        fac = facs_ref[out_idx]        # scalar U(0, noise_fac) from SMEM
        out_ref[0] = (res + fac * z).astype(out_ref.dtype)

    def kernel_plain(mh_ref, mwt_ref, img_ref, out_ref, tmp_ref):
        res = _matmuls(mh_ref, mwt_ref, img_ref, tmp_ref)
        out_ref[0] = res.astype(out_ref.dtype)

    return kernel_noise if with_noise else kernel_plain


def make_cutouts(x, cut_size, cutn=64, cut_pow=1.0, noise_fac=0.1, seed=0,
                 out_dtype=None):
    n, c, sideY, sideX = x.shape
    max_size = min(sideX, sideY)
    min_size = min(sideX, sideY, cut_size)

    # Output lane handling: if cut_size is sublane-friendly store the true
    # width directly (no padded store, no post-kernel unpad slice — the slice
    # would double output HBM traffic).  Otherwise pad to 128 lanes and slice.
    if cut_size % 8 == 0:
        s_pad = cut_size
    else:
        s_pad = ((cut_size + 127) // 128) * 128

    # Deterministic replacement for torch.rand / torch.randint (host-side, shapes static).
    rng = np.random.default_rng(seed)
    mh_list, mwt_list = [], []
    for _ in range(cutn):
        size = int(rng.random() ** cut_pow * (max_size - min_size) + min_size)
        offsetx = int(rng.integers(0, sideX - size + 1))
        offsety = int(rng.integers(0, sideY - size + 1))
        mh_list.append(_crop_resample_matrix(sideY, offsety, size, cut_size))
        mw = _crop_resample_matrix(sideX, offsetx, size, cut_size)       # (S, sideX)
        mwt = np.zeros((sideX, s_pad), dtype=np.float32)
        mwt[:, :cut_size] = mw.T                 # host-side transpose (MXU-preferred form)
        mwt_list.append(mwt)
    mh = jnp.asarray(np.stack(mh_list), dtype=jnp.bfloat16)      # (cutn, S, sideY)
    mwt = jnp.asarray(np.stack(mwt_list), dtype=jnp.bfloat16)    # (cutn, sideX, s_pad)
    x_bf = x.astype(jnp.bfloat16)                                # halves image HBM traffic

    # TODO(synk): the kornia augmentation pipeline (RandomHorizontalFlip, RandomSharpness,
    # RandomElasticTransform, RandomAffine, RandomPerspective, ColorJitter, RandomGrayscale)
    # has no clean Pallas equivalent; it is treated as identity here.

    b_out = cutn * n
    rows = c * cut_size
    with_noise = float(noise_fac) > 0.0
    out_dtype = x.dtype if out_dtype is None else jnp.dtype(out_dtype)
    itemsize = jnp.dtype(out_dtype).itemsize

    # Explicit VMEM budget (double-buffered bf16 image + mh/mwT + out + bf16 scratch),
    # clamped to the real device capacity (v7x: 64 MiB/TC; v5e/v6e: 128 MiB).
    vmem_bytes = (2 * c * sideY * sideX * 2
                  + 2 * cut_size * sideY * 2
                  + 2 * sideX * s_pad * 2
                  + 2 * rows * s_pad * itemsize
                  + rows * sideX * 2)
    try:
        vmem_cap = int(pltpu.get_tpu_info().vmem_capacity_bytes)
    except Exception:
        vmem_cap = 64 * 2 ** 20      # safe floor across generations (v7x per-TC)
    vmem_limit = int(min(int(0.85 * vmem_cap),
                         max(32 * 2 ** 20, int(vmem_bytes * 1.5))))

    kernel = _cutout_kernel_factory(c, cut_size, sideX, s_pad, n, with_noise, int(seed))

    in_specs = [
        pl.BlockSpec((1, cut_size, sideY), lambda b, i: (i, 0, 0)),       # M_h
        pl.BlockSpec((1, sideX, s_pad), lambda b, i: (i, 0, 0)),          # M_w^T
        pl.BlockSpec((1, c, sideY, sideX), lambda b, i: (b, 0, 0, 0)),    # image (resident)
    ]
    args = [mh, mwt, x_bf]
    facs = None
    if with_noise:
        facs = jax.random.uniform(jax.random.PRNGKey(seed), (b_out,), dtype=jnp.float32,
                                  minval=0.0, maxval=float(noise_fac))
        in_specs.append(pl.BlockSpec(memory_space=pltpu.MemorySpace.SMEM))  # facs
        args.append(facs)

    # Advisory cost estimate so XLA can schedule/overlap around the call.
    steps = n * cutn
    flops = steps * (2 * rows * sideY * sideX + 2 * rows * sideX * s_pad)
    transcendentals = steps * 2 * rows * s_pad if with_noise else 0
    bytes_accessed = (steps * (cut_size * sideY + sideX * s_pad) * 2
                      + n * c * sideY * sideX * 2
                      + b_out * rows * s_pad * itemsize)

    out_flat = pl.pallas_call(
        kernel,
        out_shape=jax.ShapeDtypeStruct((b_out, rows, s_pad), out_dtype),
        grid_spec=pltpu.PrefetchScalarGridSpec(
            num_scalar_prefetch=0,
            grid=(n, cutn),            # batch OUTER so the image isn't re-DMA'd per cutout
            in_specs=in_specs,
            out_specs=pl.BlockSpec((1, rows, s_pad),
                                   lambda b, i: (i * n + b, 0, 0)),
            scratch_shapes=[pltpu.VMEM((rows, sideX), jnp.bfloat16)],
        ),
        compiler_params=pltpu.CompilerParams(
            # Both axes parallel: on v7x the compiler may shard the cutn axis
            # across the two TensorCores even when n == 1.
            dimension_semantics=("parallel", "parallel"),
            vmem_limit_bytes=vmem_limit),
        cost_estimate=pl.CostEstimate(flops=int(flops),
                                      transcendentals=int(transcendentals),
                                      bytes_accessed=int(bytes_accessed)),
    )(*args)

    out = out_flat.reshape(b_out, c, cut_size, s_pad)   # free bitcast reshape
    if s_pad != cut_size:
        out = out[..., :cut_size]
    return out, (mh, mwt, facs)


if __name__ == "__main__":
    n, c, side = 2, 4, 16
    cut_size, cutn = 8, 8

    key = jax.random.PRNGKey(0)
    x = jax.random.normal(key, (n, c, side, side), dtype=jnp.float32)

    # Noise-free run (dedicated kernel variant): check the matmul path against
    # plain-JAX folded operators.
    out0, (mh, mwt, _) = make_cutouts(x, cut_size, cutn=cutn, cut_pow=1.0,
                                      noise_fac=0.0, seed=0)
    out0 = jax.block_until_ready(out0)
    assert out0.shape == (cutn * n, c, cut_size, cut_size)

    mw = jnp.swapaxes(mwt, 1, 2)[:, :cut_size, :]                 # (cutn, S, sideX)
    ref = jnp.einsum("ish,bchw,itw->ibcst",
                     mh.astype(jnp.float32),
                     x.astype(jnp.bfloat16).astype(jnp.float32),
                     mw.astype(jnp.float32)).reshape(cutn * n, c, cut_size, cut_size)
    np.testing.assert_allclose(np.asarray(out0), np.asarray(ref), rtol=5e-2, atol=5e-2)

    # Noisy run: same cutouts, in-kernel Gaussian noise scaled by U(0, noise_fac).
    out1, _ = make_cutouts(x, cut_size, cutn=cutn, cut_pow=1.0, noise_fac=0.1, seed=0)
    out1 = jax.block_until_ready(out1)
    assert out1.shape == (cutn * n, c, cut_size, cut_size)
    assert np.isfinite(np.asarray(out1)).all()
    mean_noise = float(np.abs(np.asarray(out1) - np.asarray(out0)).mean())
    assert 1e-3 < mean_noise < 0.2, mean_noise   # ~E[fac]*E|z| ≈ 0.04

    print("KERNEL_OK")
</pallas_src>

<mosaic_0001>
module attributes {stable_mosaic.version = 11 : i64} {
  func.func @kernel_plain(%arg0: i32, %arg1: i32, %arg2: memref<1x8x16xbf16, #tpu.memory_space<vmem>>, %arg3: memref<1x16x8xbf16, #tpu.memory_space<vmem>>, %arg4: memref<1x4x16x16xbf16, #tpu.memory_space<vmem>>, %arg5: memref<1x32x8xf32, #tpu.memory_space<vmem>>, %arg6: memref<32x16xbf16, #tpu.memory_space<vmem>>) attributes {dimension_semantics = [#tpu.dimension_semantics<parallel>, #tpu.dimension_semantics<parallel>], iteration_bounds = array<i64: 2, 8>, scalar_prefetch = 0 : i64, scratch_operands = 1 : i64, tpu.core_type = #tpu.core_type<tc>, window_params = [{transform_indices = @transform_0, window_bounds = array<i64: 1, 8, 16>}, {transform_indices = @transform_1, window_bounds = array<i64: 1, 16, 8>}, {transform_indices = @transform_2, window_bounds = array<i64: 1, 4, 16, 16>}, {transform_indices = @transform_3, window_bounds = array<i64: 1, 32, 8>}]} {
    %c0 = arith.constant 0 : index
    %c0_0 = arith.constant 0 : index
    %c0_1 = arith.constant 0 : index
    %0 = vector.load %arg2[%c0, %c0_0, %c0_1] : memref<1x8x16xbf16, #tpu.memory_space<vmem>>, vector<1x8x16xbf16>
    %1 = vector.shape_cast %0 : vector<1x8x16xbf16> to vector<8x16xbf16>
    %c0_2 = arith.constant 0 : index
    %c0_3 = arith.constant 0 : index
    %c0_4 = arith.constant 0 : index
    %2 = vector.load %arg3[%c0_2, %c0_3, %c0_4] : memref<1x16x8xbf16, #tpu.memory_space<vmem>>, vector<1x16x8xbf16>
    %3 = vector.shape_cast %2 : vector<1x16x8xbf16> to vector<16x8xbf16>
    %c0_5 = arith.constant 0 : index
    %c0_6 = arith.constant 0 : index
    %c0_7 = arith.constant 0 : index
    %c0_8 = arith.constant 0 : index
    %4 = vector.load %arg4[%c0_5, %c0_6, %c0_7, %c0_8] : memref<1x4x16x16xbf16, #tpu.memory_space<vmem>>, vector<1x1x16x16xbf16>
    %5 = vector.shape_cast %4 : vector<1x1x16x16xbf16> to vector<16x16xbf16>
    %cst = arith.constant dense<0.000000e+00> : vector<8x16xf32>
    %6 = tpu.matmul %1, %5, %cst {dimension_numbers = #tpu.dot_dimension_numbers<[1], [0], [0], [1], [0, 0, 1, 1], [], []>} : vector<8x16xbf16>, vector<16x16xbf16>, vector<8x16xf32> -> vector<8x16xf32>
    %7 = arith.truncf %6 : vector<8x16xf32> to vector<8x16xbf16>
    %c0_9 = arith.constant 0 : index
    %c0_10 = arith.constant 0 : index
    %8 = vector.load %arg6[%c0_9, %c0_10] : memref<32x16xbf16, #tpu.memory_space<vmem>>, vector<8x16xbf16>
    tpu.vector_store %arg6[%c0_9, %c0_10], %7 {strides = array<i32>} : memref<32x16xbf16, #tpu.memory_space<vmem>>, vector<8x16xbf16>,
    %c0_11 = arith.constant 0 : index
    %c1 = arith.constant 1 : index
    %c0_12 = arith.constant 0 : index
    %c0_13 = arith.constant 0 : index
    %9 = vector.load %arg4[%c0_11, %c1, %c0_12, %c0_13] : memref<1x4x16x16xbf16, #tpu.memory_space<vmem>>, vector<1x1x16x16xbf16>
    %10 = vector.shape_cast %9 : vector<1x1x16x16xbf16> to vector<16x16xbf16>
    %cst_14 = arith.constant dense<0.000000e+00> : vector<8x16xf32>
    %11 = tpu.matmul %1, %10, %cst_14 {dimension_numbers = #tpu.dot_dimension_numbers<[1], [0], [0], [1], [0, 0, 1, 1], [], []>} : vector<8x16xbf16>, vector<16x16xbf16>, vector<8x16xf32> -> vector<8x16xf32>
    %12 = arith.truncf %11 : vector<8x16xf32> to vector<8x16xbf16>
    %c8 = arith.constant 8 : index
    %c0_15 = arith.constant 0 : index
    %13 = vector.load %arg6[%c8, %c0_15] : memref<32x16xbf16, #tpu.memory_space<vmem>>, vector<8x16xbf16>
    tpu.vector_store %arg6[%c8, %c0_15], %12 {strides = array<i32>} : memref<32x16xbf16, #tpu.memory_space<vmem>>, vector<8x16xbf16>,
    %c0_16 = arith.constant 0 : index
    %c2 = arith.constant 2 : index
    %c0_17 = arith.constant 0 : index
    %c0_18 = arith.constant 0 : index
    %14 = vector.load %arg4[%c0_16, %c2, %c0_17, %c0_18] : memref<1x4x16x16xbf16, #tpu.memory_space<vmem>>, vector<1x1x16x16xbf16>
    %15 = vector.shape_cast %14 : vector<1x1x16x16xbf16> to vector<16x16xbf16>
    %cst_19 = arith.constant dense<0.000000e+00> : vector<8x16xf32>
    %16 = tpu.matmul %1, %15, %cst_19 {dimension_numbers = #tpu.dot_dimension_numbers<[1], [0], [0], [1], [0, 0, 1, 1], [], []>} : vector<8x16xbf16>, vector<16x16xbf16>, vector<8x16xf32> -> vector<8x16xf32>
    %17 = arith.truncf %16 : vector<8x16xf32> to vector<8x16xbf16>
    %c16 = arith.constant 16 : index
    %c0_20 = arith.constant 0 : index
    %18 = vector.load %arg6[%c16, %c0_20] : memref<32x16xbf16, #tpu.memory_space<vmem>>, vector<8x16xbf16>
    tpu.vector_store %arg6[%c16, %c0_20], %17 {strides = array<i32>} : memref<32x16xbf16, #tpu.memory_space<vmem>>, vector<8x16xbf16>,
    %c0_21 = arith.constant 0 : index
    %c3 = arith.constant 3 : index
    %c0_22 = arith.constant 0 : index
    %c0_23 = arith.constant 0 : index
    %19 = vector.load %arg4[%c0_21, %c3, %c0_22, %c0_23] : memref<1x4x16x16xbf16, #tpu.memory_space<vmem>>, vector<1x1x16x16xbf16>
    %20 = vector.shape_cast %19 : vector<1x1x16x16xbf16> to vector<16x16xbf16>
    %cst_24 = arith.constant dense<0.000000e+00> : vector<8x16xf32>
    %21 = tpu.matmul %1, %20, %cst_24 {dimension_numbers = #tpu.dot_dimension_numbers<[1], [0], [0], [1], [0, 0, 1, 1], [], []>} : vector<8x16xbf16>, vector<16x16xbf16>, vector<8x16xf32> -> vector<8x16xf32>
    %22 = arith.truncf %21 : vector<8x16xf32> to vector<8x16xbf16>
    %c24 = arith.constant 24 : index
    %c0_25 = arith.constant 0 : index
    %23 = vector.load %arg6[%c24, %c0_25] : memref<32x16xbf16, #tpu.memory_space<vmem>>, vector<8x16xbf16>
    tpu.vector_store %arg6[%c24, %c0_25], %22 {strides = array<i32>} : memref<32x16xbf16, #tpu.memory_space<vmem>>, vector<8x16xbf16>,
    %c0_26 = arith.constant 0 : index
    %c0_27 = arith.constant 0 : index
    %24 = vector.load %arg6[%c0_26, %c0_27] : memref<32x16xbf16, #tpu.memory_space<vmem>>, vector<32x16xbf16>
    %cst_28 = arith.constant dense<0.000000e+00> : vector<32x8xf32>
    %25 = tpu.matmul %24, %3, %cst_28 {dimension_numbers = #tpu.dot_dimension_numbers<[1], [0], [0], [1], [0, 0, 1, 1], [], []>} : vector<32x16xbf16>, vector<16x8xbf16>, vector<32x8xf32> -> vector<32x8xf32>
    %c0_29 = arith.constant 0 : index
    %c0_30 = arith.constant 0 : index
    %c0_31 = arith.constant 0 : index
    %26 = vector.load %arg5[%c0_29, %c0_30, %c0_31] : memref<1x32x8xf32, #tpu.memory_space<vmem>>, vector<1x32x8xf32>
    %27 = vector.shape_cast %26 : vector<1x32x8xf32> to vector<32x8xf32>
    %28 = vector.shape_cast %25 : vector<32x8xf32> to vector<1x32x8xf32>
    tpu.vector_store %arg5[%c0_29, %c0_30, %c0_31], %28 {strides = array<i32>} : memref<1x32x8xf32, #tpu.memory_space<vmem>>, vector<1x32x8xf32>,
    return
  }
  func.func @transform_0(%arg0: i32, %arg1: i32) -> (i32, i32, i32) {
    %c0_i32 = arith.constant 0 : i32
    %c0_i32_0 = arith.constant 0 : i32
    %c0_i32_1 = arith.constant 0 : i32
    return %arg1, %c0_i32, %c0_i32_0 : i32, i32, i32
  }
  func.func @transform_1(%arg0: i32, %arg1: i32) -> (i32, i32, i32) {
    %c0_i32 = arith.constant 0 : i32
    %c0_i32_0 = arith.constant 0 : i32
    %c0_i32_1 = arith.constant 0 : i32
    return %arg1, %c0_i32, %c0_i32_0 : i32, i32, i32
  }
  func.func @transform_2(%arg0: i32, %arg1: i32) -> (i32, i32, i32, i32) {
    %c0_i32 = arith.constant 0 : i32
    %c0_i32_0 = arith.constant 0 : i32
    %c0_i32_1 = arith.constant 0 : i32
    %c0_i32_2 = arith.constant 0 : i32
    return %arg0, %c0_i32, %c0_i32_0, %c0_i32_1 : i32, i32, i32, i32
  }
  func.func @transform_3(%arg0: i32, %arg1: i32) -> (i32, i32, i32) {
    %c2_i32 = arith.constant 2 : i32
    %0 = arith.muli %arg1, %c2_i32 : i32
    %1 = arith.addi %0, %arg0 : i32
    %c0_i32 = arith.constant 0 : i32
    %c0_i32_0 = arith.constant 0 : i32
    %c0_i32_1 = arith.constant 0 : i32
    return %1, %c0_i32, %c0_i32_0 : i32, i32, i32
  }
}

</mosaic_0001>

<bundles_post_ra>
// kernel: tpu_custom_call.1
= control target key start
LH: loop header
LB: loop body
LE: loop exit
PB: predicated region body
PF: predicated region fallthrough
CT: control target
= control target key end

     0   :  { %s648_s12 = smov 0   ;;  %s650_s13 = smov 0   ;;  %s721_s0 = inlined_call_operand.vmem [shape: bf16[8,8,16], index: 0, kind: input, shape index: {}]   ;;  %s722_s1 = inlined_call_operand.vmem [shape: bf16[8,16,8], index: 1, kind: input, shape index: {}]   ;;  %s723_s2 = inlined_call_operand.vmem [shape: bf16[2,4,16,16], index: 2, kind: input, shape index: {}]   ;;  %s724_s3 = inlined_call_operand.vmem [shape: f32[16,32,8], index: 3, kind: output, shape index: {}]  }
   0x1   :  { %s652_s14 = smov 0   ;;  %s654_s15 = smov 0  }
   0x2   :  { %s656_s16 = smov 0  }
   0x3 LB: > { %s22_s17 = sadd.s32 1, %s618_s14  ;;  %s25_s18 = sadd.s32 1, %s622_s15  ;;  %s626_s16 = sphi %s656_s16, %s13_s16   ;;  %s622_s15 = sphi %s654_s15, %s728_s15   ;;  %s618_s14 = sphi %s652_s14, %s727_s14   ;;  %s614_s13 = sphi %s650_s13, %s726_s13   ;;  %s610_s12 = sphi %s648_s12, %s725_s12  }
   0x4   : > { %p23_p0 = scmp.ge.s32.totalorder %s22_s17, 8  ;;  %p487_p1 = scmp.ge.s32.totalorder %s626_s16, 1 }
   0x5   : > { %p172_p2 = scmp.lt.s32.totalorder %s626_s16, 17 }
   0x6   : > { %s730_s17 = smov (%p23_p0, %s22_s17), 0  ;;  %s732_s18 = smov (!%p23_p0, %s25_s18), %s622_s15 }
   0x7   : > { %p173_p3 = pnand %p487_p1, %p172_p2  ;;  %p27_p4 = scmp.ge.s32.totalorder %s732_s18, 2 }
   0x8   : > { %p216_p5 = scmp.lt.s32.totalorder (!%p173_p3), %s614_s13, 1  ;;  %p207_p6 = scmp.lt.s32.totalorder (!%p173_p3), %s610_s12, 7 }
   0x9   : > { %s734_s18 = smov (%p27_p4, %s732_s18), 0  ;;  %176 = sbr.rel (%p173_p3) target bundleno = 325 (0x145), region = 32 }
   0xa   : > { %s493_s6 = sshll.u32 (!%p173_p3), %s610_s12, 1 }
   0xb   : > { %s222_s7 = sadd.s32 (!%p173_p3), %s614_s13, %s493_s6 }
   0xc   : > { %p223_p7 = scmp.lt.s32.totalorder (!%p173_p3), %s222_s7, 15 }
   0xe   : > { %s217_s19 = scalar_select %p216_p5, %s614_s13, 1  ;;  %vm242_vm0 = vcmask 130048   ;;  %vm260_vm1 = vcmask 125952   ;;  %vm379_vm2 = vcmask 64512  }
   0xf   : > { %s208_s20 = scalar_select %p207_p6, %s610_s12, 7 }
  0x10   : > { %s539_s21 = sshll.u32 %s217_s19, 5  ;;  %s736_s7 = smov (!%p223_p7, %s222_s7), 15 }
  0x11   : > { %s220_s24 = scalar_lea.vmem %s723_s2, %s539_s21  ;;  %s488_s25 = sshll.u32 %s208_s20, 2 }
  0x12   : > { %v542_v0 = vld [vmem:[%s220_s24] sm:$0xff]  ;;  %s210_s28 = scalar_lea.vmem %s721_s0, %s488_s25  ;;  %v543_v1 = vld [vmem:[%s220_s24 + $0x8] sm:$0xff]  ;;  %v544_v2 = vld [vmem:[%s220_s24 + $0x10] sm:$0xff]  ;;  %s538_s29 = sshll.u32 %s208_s20, 3 }
  0x13   : > { %v545_v3 = vld [vmem:[%s220_s24 + $0x18] sm:$0xff]  ;;  %253 = vmatpush.bf16.msra.mxu1 %v542_v0  ;;  %v231_v4 = vld [vmem:[%s210_s28] sm:$0xf]  ;;  %302 = vmatpush.bf16.msra.mxu2 %v544_v2  ;;  %s215_s5 = scalar_lea.vmem %s722_s1, %s538_s29  ;;  %s540_s8 = sshll.u32 %s736_s7, 5 }
  0x14   : > { %326 = vmatpush.bf16.msra.mxu3 %v545_v3  ;;  %v541_v5 = vld [vmem:[%s215_s5] sm:$0xff]  ;;  %s227_s11 = scalar_lea.vmem %s724_s3, %s540_s8 }
  0x15   : > { %367 = vmatpush.bf16.msra.mxu0 %v541_v5 }
  0x16   : > { %500 = vmatmul.msk.bf16.vlgmr.msra.gmra.mxu1 %vm242_vm0, %v231_v4  ;;  %514 = vmatmul.msk.bf16.vlgmr.msra.gmra.mxu2 %vm242_vm0, %v231_v4 }
  0x17   : > { %278 = vmatpush.bf16.msrb.mxu1 %v543_v1  ;;  %521 = vmatmul.msk.bf16.vlgmr.msra.gmra.mxu3 %vm242_vm0, %v231_v4 }
  0x26   : > { %507 = vmatmul.msk.bf16.vlgmr.msrb.gmra.mxu1 %vm242_vm0, %v231_v4 }
  0x93   : > { %v255_v6 = vpop.f32.mrf.mxu1 }
  0x94   : > { %v259_v7 = vpack.c.bf16 %v255_v6, %v255_v6 }
  0x96   : > { %261 = vst.msk [vmem:[#allocation2] sm:$0xf] %vm260_vm1, %v259_v7 }
  0x99   : > { %v304_v8 = vpop.f32.mrf.mxu2 }
  0x9a   : > { %v308_v9 = vpack.c.bf16 %v304_v8, %v304_v8  ;;  %v328_v10 = vpop.f32.mrf.mxu3 }
  0x9b   : > { %v257_v11 = vpop.f32.mrf.mxu1  ;;  %v332_v12 = vpack.c.bf16 %v328_v10, %v328_v10 }
  0x9c   : > { %309 = vst.msk [vmem:[#allocation2 + $0x8] sm:$0xf] %vm260_vm1, %v308_v9 }
  0x9d   : > { %333 = vst.msk [vmem:[#allocation2 + $0xc] sm:$0xf] %vm260_vm1, %v332_v12 }
  0xa1   : > { %v306_v13 = vpop.f32.mrf.mxu2 }
  0xa2   : > { %v330_v14 = vpop.f32.mrf.mxu3 }
  0xa3   : > { %v280_v15 = vpop.f32.mrf.mxu1 }
  0xa4   : > { %v284_v16 = vpack.c.bf16 %v280_v15, %v280_v15  ;;  %v547_v19 = vld [vmem:[#allocation2 + $0x8] sm:$0xff] }
  0xa6   : > { %285 = vst.msk [vmem:[#allocation2 + $0x4] sm:$0xf] %vm260_vm1, %v284_v16 }
  0xab   : > { %v282_v17 = vpop.f32.mrf.mxu1 }
  0xad   : > { %v546_v18 = vld [vmem:[#allocation2] sm:$0xff] }
  0xae   : > { %534 = vmatmul.msk.bf16.vlgmr.msra.gmra.mxu0 %vm242_vm0, %v546_v18 }
  0xbe   : > { %535 = vmatmul.msk.bf16.gmra.mxu0 %vm242_vm0, %v547_v19 }
 0x12b   : > { %v369_v20 = vpop.f32.mrf.mxu0 }
 0x12c   : > { %380 = vst.msk [vmem:[%s227_s11] sm:$0xff] %vm379_vm2, %v369_v20 }
 0x133   : > { %v371_v21 = vpop.f32.mrf.mxu0 }
 0x134   : > { %381 = vst.msk [vmem:[%s227_s11 + $0x8] sm:$0xff] %vm379_vm2, %v371_v21 }
 0x13b   : > { %v374_v22 = vpop.f32.mrf.mxu0 }
 0x13c   : > { %382 = vst.msk [vmem:[%s227_s11 + $0x10] sm:$0xff] %vm379_vm2, %v374_v22 }
 0x143   : > { %v376_v23 = vpop.f32.mrf.mxu0 }
 0x144   : > { %383 = vst.msk [vmem:[%s227_s11 + $0x18] sm:$0xff] %vm379_vm2, %v376_v23 }
 0x145 PF: > { %s13_s16 = sadd.s32 1, %s626_s16   ;;  %s725_s12 = smov %s618_s14 }
 0x146   : > { %p10_p8 = scmp.ge.s32.totalorder %s13_s16, 18   ;;  %s726_s13 = smov %s622_s15 }
 0x147   : > { %s727_s14 = smov %s730_s17  ;;  %s728_s15 = smov %s734_s18 }
 0x148   :  { %12 = sbr.rel (!%p10_p8) target bundleno = 3 (0x3), region = 71 }

</bundles_post_ra>
